<compile_context>
chip_gen: v5e
topology: v5e:2x2
jax: 0.10.0
libtpu: 0.0.40
codegen_flags: <defaults>
</compile_context>

<pallas_src>
import functools

import jax
import jax.numpy as jnp
from jax.experimental import pallas as pl
from jax.experimental.pallas import tpu as pltpu

_LANES = 128
_MAX_BLOCK_ROWS = 2048          # (2048, 128) f32 block = 1 MiB per buffer
_SQRT2 = 1.4142                 # constant used verbatim in the PyTorch reference


# ---------------------------------------------------------------------------
# Kernels
# ---------------------------------------------------------------------------
def _elementwise_loss(mu_ref, lv_ref, tgt_ref):
    mu = mu_ref[...]
    lv = lv_ref[...]
    tgt = tgt_ref[...]
    return _SQRT2 * jnp.exp(-lv) * jnp.abs(mu - tgt) + lv


def _loss_none_kernel(mu_ref, lv_ref, tgt_ref, loss_ref):
    # reduction='none': write the full elementwise loss tile.
    loss_ref[...] = _elementwise_loss(mu_ref, lv_ref, tgt_ref)


def _loss_psum_kernel(mu_ref, lv_ref, tgt_ref, psum_ref):
    # reduction in {'sum','mean'}: write one (1, 128) partial sum per tile,
    # no elementwise output.  Each grid step writes a distinct output block,
    # so the grid axis can be 'parallel'.
    loss = _elementwise_loss(mu_ref, lv_ref, tgt_ref)
    psum_ref[...] = jnp.sum(loss, axis=0, keepdims=True)


# ---------------------------------------------------------------------------
# Wrapper plumbing
# ---------------------------------------------------------------------------
def _round_up(x, m):
    return ((x + m - 1) // m) * m


def _prep(mu, lv, tgt):
    """Flat f32 arrays -> zero-padded (rows_pad, 128) lane-dense slabs."""
    n = mu.size
    rows = pl.cdiv(n, _LANES)
    block_rows = min(_MAX_BLOCK_ROWS, _round_up(rows, 8))
    grid = pl.cdiv(rows, block_rows)
    rows_pad = grid * block_rows
    n_pad = rows_pad * _LANES

    # TODO(synk): the slice/pad/reshape producers are not fused into the
    # pallas_call input pipeline (allow_input_fusion not enabled here).
    def to_tiles(x):
        if n_pad != n:
            x = jnp.pad(x, (0, n_pad - n))
        return x.reshape(rows_pad, _LANES)

    return (to_tiles(mu), to_tiles(lv), to_tiles(tgt)), n, rows_pad, block_rows, grid


def _run_sum(mu, lv, tgt):
    """Returns (loss_sum, n) for the 'sum'/'mean' paths."""
    (mu2, lv2, tg2), n, rows_pad, block_rows, grid = _prep(mu, lv, tgt)
    in_spec = pl.BlockSpec((block_rows, _LANES), lambda i: (i, 0))
    n_pad = rows_pad * _LANES
    cost = pl.CostEstimate(
        flops=5 * n_pad,
        transcendentals=n_pad,
        bytes_accessed=(3 * n_pad + grid * _LANES) * 4,
    )
    partials = pl.pallas_call(
        _loss_psum_kernel,
        out_shape=jax.ShapeDtypeStruct((grid, _LANES), jnp.float32),
        grid_spec=pltpu.PrefetchScalarGridSpec(
            num_scalar_prefetch=0,
            grid=(grid,),
            in_specs=[in_spec, in_spec, in_spec],
            out_specs=pl.BlockSpec((1, _LANES), lambda i: (i, 0)),
        ),
        compiler_params=pltpu.CompilerParams(
            dimension_semantics=("parallel",)),
        cost_estimate=cost,
    )(mu2, lv2, tg2)
    # Tiny final reduction (grid*128 values) in plain JAX.
    return jnp.sum(partials), n


def _run_none(mu, lv, tgt):
    """Returns the flat elementwise loss (length n) for the 'none' path."""
    (mu2, lv2, tg2), n, rows_pad, block_rows, grid = _prep(mu, lv, tgt)
    spec = pl.BlockSpec((block_rows, _LANES), lambda i: (i, 0))
    n_pad = rows_pad * _LANES
    cost = pl.CostEstimate(
        flops=5 * n_pad,
        transcendentals=n_pad,
        bytes_accessed=4 * n_pad * 4,
    )
    loss_tiles = pl.pallas_call(
        _loss_none_kernel,
        out_shape=jax.ShapeDtypeStruct((rows_pad, _LANES), jnp.float32),
        grid_spec=pltpu.PrefetchScalarGridSpec(
            num_scalar_prefetch=0,
            grid=(grid,),
            in_specs=[spec, spec, spec],
            out_specs=spec,
        ),
        compiler_params=pltpu.CompilerParams(
            dimension_semantics=("parallel",)),
        cost_estimate=cost,
    )(mu2, lv2, tg2)
    return loss_tiles.reshape(-1)[:n]


@functools.partial(jax.jit, static_argnames=("reduction", "loss_weight"))
def laplace_l1_loss(pred, target, reduction="mean", loss_weight=1.0,
                    avg_factor=None):
    """Forward pass of LaplaceL1Loss (weight=None path).

    pred:   [..., 2]  (value, log_variance)
    target: [..., 1]
    """
    # TODO(synk): per-element `weight` tensor not plumbed into the kernel
    # (PyTorch default forward call uses weight=None).
    if target.size == 0:
        return jnp.zeros((), dtype=jnp.float32) * loss_weight

    mu = pred[..., 0].reshape(-1).astype(jnp.float32)
    lv = pred[..., 1].reshape(-1).astype(jnp.float32)
    tgt = target[..., 0].reshape(-1).astype(jnp.float32)

    if reduction == "none":
        out = _run_none(mu, lv, tgt).reshape(target.shape)
    elif reduction in ("sum", "mean"):
        loss_sum, n = _run_sum(mu, lv, tgt)
        if reduction == "sum":
            out = loss_sum
        else:  # mean
            denom = jnp.float32(n) if avg_factor is None else jnp.float32(avg_factor)
            out = loss_sum / denom
    else:
        raise ValueError(f"bad reduction: {reduction}")

    return loss_weight * out


# ---------------------------------------------------------------------------
# Pure-JAX reference + self-test
# ---------------------------------------------------------------------------
def _reference(pred, target, reduction="mean", loss_weight=1.0):
    lv = pred[..., 1:].astype(jnp.float32)
    mu = pred[..., :1].astype(jnp.float32)
    tgt = target.astype(jnp.float32)
    loss = _SQRT2 * jnp.exp(-lv) * jnp.abs(mu - tgt) + lv
    if reduction == "mean":
        loss = loss.mean()
    elif reduction == "sum":
        loss = loss.sum()
    return loss_weight * loss


if __name__ == "__main__":
    key = jax.random.PRNGKey(0)
    k1, k2, k3, k4 = jax.random.split(key, 4)

    # Small test: pred [..., 2] = (value, log_variance); target [..., 1]
    pred = jax.random.normal(k1, (2, 4, 16, 2), dtype=jnp.float32)
    target = jax.random.normal(k2, (2, 4, 16, 1), dtype=jnp.float32)

    out_mean = laplace_l1_loss(pred, target, reduction="mean", loss_weight=1.0)
    out_sum = laplace_l1_loss(pred, target, reduction="sum", loss_weight=1.0)
    out_none = laplace_l1_loss(pred, target, reduction="none", loss_weight=1.0)
    jax.block_until_ready((out_mean, out_sum, out_none))

    assert jnp.allclose(out_mean, _reference(pred, target, "mean"), rtol=1e-5, atol=1e-5)
    assert jnp.allclose(out_sum, _reference(pred, target, "sum"), rtol=1e-5, atol=1e-4)
    assert jnp.allclose(out_none, _reference(pred, target, "none"), rtol=1e-5, atol=1e-5)

    # Medium test that exercises multiple grid steps (2560 rows -> grid=2)
    # and a non-tile-aligned element count.
    pred_m = jax.random.normal(k3, (2, 2048, 80, 2), dtype=jnp.float32)
    target_m = jax.random.normal(k4, (2, 2048, 80, 1), dtype=jnp.float32)
    out_m = laplace_l1_loss(pred_m, target_m, reduction="mean", loss_weight=2.0)
    out_m_sum = laplace_l1_loss(pred_m, target_m, reduction="sum", loss_weight=1.0)
    jax.block_until_ready((out_m, out_m_sum))
    assert jnp.allclose(out_m, _reference(pred_m, target_m, "mean", 2.0), rtol=1e-5, atol=1e-5)
    assert jnp.allclose(out_m_sum, _reference(pred_m, target_m, "sum"), rtol=1e-5, atol=1e-2)

    print("KERNEL_OK")
</pallas_src>

<mosaic_0001>
module attributes {stable_mosaic.version = 11 : i64} {
  func.func @_loss_psum_kernel(%arg0: i32, %arg1: memref<8x128xf32, #tpu.memory_space<vmem>>, %arg2: memref<8x128xf32, #tpu.memory_space<vmem>>, %arg3: memref<8x128xf32, #tpu.memory_space<vmem>>, %arg4: memref<1x128xf32, #tpu.memory_space<vmem>>) attributes {dimension_semantics = [#tpu.dimension_semantics<parallel>], iteration_bounds = array<i64: 1>, scalar_prefetch = 0 : i64, scratch_operands = 0 : i64, tpu.core_type = #tpu.core_type<tc>, window_params = [{transform_indices = @transform_0, window_bounds = array<i64: 8, 128>}, {transform_indices = @transform_1, window_bounds = array<i64: 8, 128>}, {transform_indices = @transform_2, window_bounds = array<i64: 8, 128>}, {transform_indices = @transform_3, window_bounds = array<i64: 1, 128>}]} {
    %c0 = arith.constant 0 : index
    %c0_0 = arith.constant 0 : index
    %0 = vector.load %arg1[%c0, %c0_0] : memref<8x128xf32, #tpu.memory_space<vmem>>, vector<8x128xf32>
    %c0_1 = arith.constant 0 : index
    %c0_2 = arith.constant 0 : index
    %1 = vector.load %arg2[%c0_1, %c0_2] : memref<8x128xf32, #tpu.memory_space<vmem>>, vector<8x128xf32>
    %c0_3 = arith.constant 0 : index
    %c0_4 = arith.constant 0 : index
    %2 = vector.load %arg3[%c0_3, %c0_4] : memref<8x128xf32, #tpu.memory_space<vmem>>, vector<8x128xf32>
    %cst = arith.constant 0.000000e+00 : f32
    %3 = vector.broadcast %cst : f32 to vector<8x128xf32>
    %4 = arith.subf %3, %1 : vector<8x128xf32>
    %5 = math.exp %4 : vector<8x128xf32>
    %cst_5 = arith.constant 1.414200e+00 : f32
    %6 = vector.broadcast %cst_5 : f32 to vector<8x128xf32>
    %7 = arith.mulf %6, %5 : vector<8x128xf32>
    %8 = arith.subf %0, %2 : vector<8x128xf32>
    %9 = math.absf %8 : vector<8x128xf32>
    %10 = arith.mulf %7, %9 : vector<8x128xf32>
    %11 = arith.addf %10, %1 : vector<8x128xf32>
    %cst_6 = arith.constant dense<0.000000e+00> : vector<128xf32>
    %12 = vector.multi_reduction <add>, %11, %cst_6 [0] : vector<8x128xf32> to vector<128xf32>
    %13 = vector.shape_cast %12 : vector<128xf32> to vector<1x128xf32>
    %c0_7 = arith.constant 0 : index
    %c0_8 = arith.constant 0 : index
    %14 = vector.load %arg4[%c0_7, %c0_8] : memref<1x128xf32, #tpu.memory_space<vmem>>, vector<1x128xf32>
    tpu.vector_store %arg4[%c0_7, %c0_8], %13 {strides = array<i32>} : memref<1x128xf32, #tpu.memory_space<vmem>>, vector<1x128xf32>,
    return
  }
  func.func @transform_0(%arg0: i32) -> (i32, i32) {
    %c0_i32 = arith.constant 0 : i32
    %c0_i32_0 = arith.constant 0 : i32
    return %arg0, %c0_i32 : i32, i32
  }
  func.func @transform_1(%arg0: i32) -> (i32, i32) {
    %c0_i32 = arith.constant 0 : i32
    %c0_i32_0 = arith.constant 0 : i32
    return %arg0, %c0_i32 : i32, i32
  }
  func.func @transform_2(%arg0: i32) -> (i32, i32) {
    %c0_i32 = arith.constant 0 : i32
    %c0_i32_0 = arith.constant 0 : i32
    return %arg0, %c0_i32 : i32, i32
  }
  func.func @transform_3(%arg0: i32) -> (i32, i32) {
    %c0_i32 = arith.constant 0 : i32
    %c0_i32_0 = arith.constant 0 : i32
    return %arg0, %c0_i32 : i32, i32
  }
}

</mosaic_0001>

<bundles_post_ra>
// kernel: squeeze.5
= control target key start
LH: loop header
LB: loop body
LE: loop exit
PB: predicated region body
PF: predicated region fallthrough
CT: control target
= control target key end

     0   :  { %vm11_vm0 = vcmask 130048   ;;  %s70_s10 = smov 80   ;;  %s71_s11 = smov 48   ;;  %vm17_vm1 = vcmask 1048448   ;;  %vm23_vm2 = vcmask 917248   ;;  %vm29_vm3 = vcmask 786048   ;;  %s95_s0 = inlined_call_operand.vmem [shape: f32[2,4,16], index: 0, kind: input, shape index: {}]   ;;  %s96_s1 = inlined_call_operand.vmem [shape: f32[128], index: 1, kind: output, shape index: {}]  }
   0x1   :  { %v61_v0 = vld [vmem:[%s95_s0 + $0x4] sm:$0xf]  ;;  %v8_v1 = vld [vmem:[%s95_s0] sm:$0xf]  ;;  %s69_s0 = smov 112   ;;  %s72_s12 = smov 96  }
   0x2   :  { %7 = vst [vmem:[#allocation1 + $0x8] sm:$0xf] %v61_v0  ;;  %s73_s13 = smov 64   ;;  %s74_s14 = smov 32   ;;  %vm35_vm4 = vcmask 654848   ;;  %vm41_vm5 = vcmask 523648  }
   0x3   :  { %9 = vst [vmem:[#allocation1] sm:$0xf] %v8_v1  ;;  %s75_s15 = smov 16   ;;  %vm47_vm6 = vcmask 392448   ;;  %vm53_vm7 = vcmask 261248  }
   0x9   :  { %v14_v2 = vld [vmem:[#allocation1 + $0xb] sm:$0x1]   ;;  %v26_v3 = vld [vmem:[#allocation1 + $0x9] sm:$0x1]   ;;  %v20_v6 = vld [vmem:[#allocation1 + $0xa] sm:$0x1]  }
   0xa   :  { %15 = vrot.lane.b32.xlu0 %v14_v2, %s69_s0  ;;  %27 = vrot.lane.b32.xlu1 %v26_v3, %s70_s10  ;;  %v38_v4 = vld [vmem:[#allocation1 + $0x3] sm:$0x1]   ;;  %v10_v5 = vld [vmem:[#allocation1] sm:$0x1]   ;;  %v32_v7 = vld [vmem:[#allocation1 + $0x8] sm:$0x1]  }
   0xb   :  { %39 = vrot.lane.b32.xlu2 %v38_v4, %s71_s11  ;;  %12 = vst.msk [vmem:[#allocation0] sm:$0x1] %vm11_vm0, %v10_v5   ;;  %v44_v8 = vld [vmem:[#allocation1 + $0x2] sm:$0x1]   ;;  %v50_v9 = vld [vmem:[#allocation1 + $0x1] sm:$0x1]  }
  0x12   :  { %21 = vrot.lane.b32.xlu0 %v20_v6, %s72_s12  ;;  %33 = vrot.lane.b32.xlu1 %v32_v7, %s73_s13 }
  0x13   :  { %45 = vrot.lane.b32.xlu2 %v44_v8, %s74_s14 }
  0x1a   :  { %51 = vrot.lane.b32.xlu0 %v50_v9, %s75_s15 }
  0x65   :  { %v40_v10 = vpop.permute.xlu2 %39  }
  0x6d   :  { %v46_v11 = vpop.permute.xlu2 %45  }
  0x7c   :  { %v16_v12 = vpop.permute.xlu0 %15   ;;  %v28_v13 = vpop.permute.xlu1 %27  }
  0x7d   :  { %18 = vst.msk [vmem:[#allocation0] sm:$0x1] %vm17_vm1, %v16_v12  }
  0x84   :  { %v22_v14 = vpop.permute.xlu0 %21   ;;  %v34_v15 = vpop.permute.xlu1 %33  }
  0x85   :  { %24 = vst.msk [vmem:[#allocation0] sm:$0x1] %vm23_vm2, %v22_v14  }
  0x86   :  { %30 = vst.msk [vmem:[#allocation0] sm:$0x1] %vm29_vm3, %v28_v13  }
  0x87   :  { %36 = vst.msk [vmem:[#allocation0] sm:$0x1] %vm35_vm4, %v34_v15  }
  0x88   :  { %42 = vst.msk [vmem:[#allocation0] sm:$0x1] %vm41_vm5, %v40_v10  }
  0x89   :  { %48 = vst.msk [vmem:[#allocation0] sm:$0x1] %vm47_vm6, %v46_v11  }
  0x8c   :  { %v52_v16 = vpop.permute.xlu0 %51  }
  0x8d   :  { %54 = vst.msk [vmem:[#allocation0] sm:$0x1] %vm53_vm7, %v52_v16  }
  0x94   :  { %v57_v17 = vld [vmem:[#allocation0] sm:$0x1] }
  0x95   :  { %60 = vst [vmem:[%s96_s1] sm:$0x1] %v57_v17 }

// kernel: laplace_l1_loss.1
= control target key start
LH: loop header
LB: loop body
LE: loop exit
PB: predicated region body
PF: predicated region fallthrough
CT: control target
= control target key end

     0   :  { %s70_s1 = inlined_call_operand.vmem [shape: f32[8,128], index: 1, kind: input, shape index: {}]   ;;  %s71_s0 = inlined_call_operand.vmem [shape: f32[8,128], index: 0, kind: input, shape index: {}]   ;;  %s72_s2 = inlined_call_operand.vmem [shape: f32[8,128], index: 2, kind: input, shape index: {}]   ;;  %s73_s3 = inlined_call_operand.vmem [shape: f32[1,128], index: 3, kind: output, shape index: {}]  }
   0x1   :  { %v15_v0 = vld [vmem:[%s70_s1] sm:$0xff] }
   0x2   :  { %v17_v1 = vsub.f32 0.0, %v15_v0  ;;  %v14_v2 = vld [vmem:[%s71_s0] sm:$0xff] }
   0x3   :  { %v16_v3 = vld [vmem:[%s72_s2] sm:$0xff] }
   0x4   :  { %v18_v4 = vmul.f32 1.442695, %v17_v1  ;;  %v21_v5 = vsub.f32 %v14_v2, %v16_v3 }
   0x6   :  { %36 = vpow2.f32 %v18_v4  ;;  %v22_v6 = vand.u32 2147483647, %v21_v5 }
   0xc   :  { %v37_v7 = vpop.eup %36 }
   0xd   :  { %v20_v8 = vmul.f32 1.4142, %v37_v7 }
   0xf   :  { %v23_v9 = vmul.f32 %v22_v6, %v20_v8 }
  0x11   :  { %v24_v10 = vadd.f32 %v23_v9, %v15_v0 }
  0x13   :  { %v25_v11 = vrot.slane %v24_v10, 4 }
  0x15   :  { %v26_v12 = vadd.f32 %v25_v11, %v24_v10 }
  0x17   :  { %v27_v13 = vrot.slane %v26_v12, 2 }
  0x19   :  { %v28_v14 = vadd.f32 %v27_v13, %v26_v12 }
  0x1b   :  { %v29_v15 = vrot.slane %v28_v14, 1 }
  0x1d   :  { %v30_v16 = vadd.f32 %v29_v15, %v28_v14 }
  0x1f   :  { %31 = vst [vmem:[%s73_s3] sm:$0x1] %v30_v16 }

</bundles_post_ra>
